<compile_context>
chip_gen: v5e
topology: v5e:2x2
jax: 0.10.0
libtpu: 0.0.40
codegen_flags: <defaults>
</compile_context>

<pallas_src>
import functools

import jax
import jax.numpy as jnp
from jax.experimental import pallas as pl
from jax.experimental.pallas import tpu as pltpu

DIM_K = 384
SCALE = DIM_K ** (-0.5)


def attention_kernel(c_ref, x_ref, o_ref, *, tk):
    """Rank-1 attention on one (N, bb) block (seq on sublanes, batch on lanes).

    c_ref : SMEM (4,) f32 -- [c1, c3, cv, cb] (c1, c3 pre-scaled by 1/sqrt(Dk))
    x_ref : VMEM (N, bb)
    o_ref : VMEM (N, bb)
    tk    : static key-chunk size bounding the (tk, N, bb) exp temp
    """
    x = x_ref[...].astype(jnp.float32)                        # (N, bb)
    c1 = c_ref[0]
    c3 = c_ref[1]
    cv = c_ref[2]
    cb = c_ref[3]

    # s[n, m, b] = a[n, b] * x[m, b]   with   a = c1*x + c3
    a = c1 * x + c3                                           # (N, bb)

    # Exact key-axis max in closed form (no (N, N) reduce needed).
    xmax = jnp.max(x, axis=0, keepdims=True)                  # (1, bb)
    xmin = jnp.min(x, axis=0, keepdims=True)                  # (1, bb)
    row_max = jnp.where(a >= 0.0, a * xmax, a * xmin)         # (N, bb)

    n = x.shape[0]
    num = jnp.zeros_like(a)      # sum_m exp(s)*x_m  (unnormalized)
    den = jnp.zeros_like(a)      # sum_m exp(s)      (softmax denominator)
    for lo in range(0, n, tk):                                # static key chunking
        hi = min(lo + tk, n)
        xk = x[lo:hi, :]                                      # (tkc, bb)
        e = jnp.exp(xk[:, None, :] * a[None, :, :]
                    - row_max[None, :, :])                    # (tkc, N, bb)
        den = den + jnp.sum(e, axis=0)                        # (N, bb)  VALU adds
        num = num + jnp.sum(e * xk[:, None, :], axis=0)       # (N, bb)

    out = cv * num * pl.reciprocal(den, approx=True) + cb     # (N, bb)
    o_ref[...] = out.astype(o_ref.dtype)


def _vmem_capacity_bytes():
    try:
        return int(pltpu.get_tpu_info().vmem_capacity_bytes)
    except Exception:
        return 64 << 20          # conservative fallback (v7x per-TC physical VMEM)


def attention_forward(x, params):
    """x: [B, N, 1].  Returns [B, N, 1]."""
    B, N, one = x.shape
    assert one == 1, "last (feature) axis must be 1, as in the PyTorch module"

    wq = params["wq"].reshape(-1)
    bq = params["bq"].reshape(-1)
    wk = params["wk"].reshape(-1)
    wv = params["wv"].reshape(-1)
    bv = params["bv"].reshape(-1)
    wd = params["wd"].reshape(-1)
    bd = params["bd"].reshape(-1)
    # Note: bk drops out exactly (softmax shift invariance along the key axis).

    # Precompute the four rank-1 coefficients once in the wrapper.
    coefs = jnp.stack([
        jnp.dot(wq, wk) * SCALE,      # c1
        jnp.dot(bq, wk) * SCALE,      # c3
        jnp.dot(wv, wd),              # cv
        jnp.dot(bv, wd) + bd[0],      # cb
    ]).astype(jnp.float32)            # (4,)

    # Lane-dense layout: batch on the 128-wide lane axis -> (N, B) working array.
    xt = jnp.squeeze(x, axis=-1).T                            # (N, B)

    # ---- tiling / VMEM sizing (generation-aware) ----------------------------
    vmem_cap = _vmem_capacity_bytes()

    if B <= 128:
        Bp, bb = B, B                  # one block spanning the full lane extent
    else:
        # lane block: keep each (N, bb) f32 slab around <= 1 MiB; bb multiple of 128
        bb_cap = max(128, ((1 << 20) // max(N * 4, 1)) // 128 * 128)
        Bp = -(-B // 128) * 128
        bb = min(Bp, bb_cap)
        if Bp // bb < 2:               # >= 2 grid blocks so v7x's two TCs both work
            bb = max(128, (Bp // 2) // 128 * 128)
        Bp = -(-B // bb) * bb
    n_blocks = Bp // bb
    if Bp != B:
        # Zero-padded batch columns produce finite junk; sliced off below.
        xt = jnp.pad(xt, ((0, 0), (0, Bp - B)))

    # Key-chunk size: bound the (tk, N, bb) f32 exp temp by a per-chip budget.
    temp_budget = max(2 << 20, vmem_cap // 16)
    tk = temp_budget // max(1, N * bb * 4)
    tk = max(tk, -(-N // 64))          # cap the statically-unrolled chunk count at 64
    tk = max(8, tk)
    tk = int(min(N, -(-tk // 8) * 8))

    # Explicit scoped-VMEM limit derived from the chosen tiles (+ headroom).
    slab = N * bb * 4
    est = 10 * slab + 2 * tk * N * bb * 4
    vmem_limit = int(min(vmem_cap * 9 // 10, max(2 * est, 16 << 20)))
    # --------------------------------------------------------------------------

    out_t = pl.pallas_call(
        functools.partial(attention_kernel, tk=tk),
        out_shape=jax.ShapeDtypeStruct((N, Bp), x.dtype),
        grid_spec=pltpu.PrefetchScalarGridSpec(
            num_scalar_prefetch=0,
            grid=(n_blocks,),
            in_specs=[
                pl.BlockSpec(memory_space=pltpu.MemorySpace.SMEM),   # coefs (4,)
                pl.BlockSpec((N, bb), lambda i: (0, i)),             # x block
            ],
            out_specs=pl.BlockSpec((N, bb), lambda i: (0, i)),
        ),
        compiler_params=pltpu.CompilerParams(
            dimension_semantics=("parallel",),
            vmem_limit_bytes=vmem_limit),
    )(coefs, xt)

    return out_t[:, :B].T.reshape(B, N, 1)


def init_params(key):
    """Deterministic synthetic weights with the same shapes as the PyTorch
    module (stored pre-transposed so references do x @ W + b)."""
    ks = jax.random.split(key, 8)

    def lin(kw, kb, fan_in, fan_out):
        bound = 1.0 / jnp.sqrt(fan_in)
        w = jax.random.uniform(kw, (fan_in, fan_out), jnp.float32, -bound, bound)
        b = jax.random.uniform(kb, (1, fan_out), jnp.float32, -bound, bound)
        return w, b

    wq, bq = lin(ks[0], ks[1], 1, DIM_K)
    wk, bk = lin(ks[2], ks[3], 1, DIM_K)
    wv, bv = lin(ks[4], ks[5], 1, DIM_K)
    wd, bd = lin(ks[6], ks[7], DIM_K, 1)
    return dict(wq=wq, bq=bq, wk=wk, bk=bk, wv=wv, bv=bv, wd=wd, bd=bd)


def attention_ref(x, p):
    """Pure-JAX reference: the full Dk=384 computation (faithful translation
    of the PyTorch forward), used to validate the rank-1 kernel."""
    q = x @ p["wq"] + p["bq"]
    k = x @ p["wk"] + p["bk"]
    v = x @ p["wv"] + p["bv"]
    w = jax.nn.softmax(jnp.einsum("bnd,bmd->bnm", q, k) * SCALE, axis=-1)
    att = jnp.einsum("bnm,bmd->bnd", w, v)
    return att @ p["wd"] + p["bd"]


if __name__ == "__main__":
    key = jax.random.PRNGKey(0)
    kx, kp = jax.random.split(key)

    B, N = 2, 8
    x = jax.random.normal(kx, (B, N, 1), jnp.float32)
    params = init_params(kp)

    out = jax.block_until_ready(attention_forward(x, params))
    ref = attention_ref(x, params)

    assert out.shape == (B, N, 1)
    # Approx reciprocal loosens agreement slightly vs the full-Dk f32 reference;
    # all algebraic simplifications (shift-invariance, closed-form max,
    # post-reduction normalization) are exact.
    err = float(jnp.max(jnp.abs(out - ref)))
    assert jnp.allclose(out, ref, atol=2e-3, rtol=2e-3), (
        f"mismatch vs reference: max abs err = {err}")

    print("KERNEL_OK")
</pallas_src>

<mosaic_0001>
module attributes {stable_mosaic.version = 11 : i64} {
  func.func @attention_kernel(%arg0: i32, %arg1: memref<4xf32, #tpu.memory_space<smem>>, %arg2: memref<8x2xf32, #tpu.memory_space<vmem>>, %arg3: memref<8x2xf32, #tpu.memory_space<vmem>>) attributes {dimension_semantics = [#tpu.dimension_semantics<parallel>], iteration_bounds = array<i64: 1>, scalar_prefetch = 0 : i64, scratch_operands = 0 : i64, tpu.core_type = #tpu.core_type<tc>, window_params = [{transform_indices = @transform_0, window_bounds = array<i64: 4>}, {transform_indices = @transform_1, window_bounds = array<i64: 8, 2>}, {transform_indices = @transform_2, window_bounds = array<i64: 8, 2>}]} {
    %c0 = arith.constant 0 : index
    %c0_0 = arith.constant 0 : index
    %0 = vector.load %arg2[%c0, %c0_0] : memref<8x2xf32, #tpu.memory_space<vmem>>, vector<8x2xf32>
    %c0_1 = arith.constant 0 : index
    %1 = memref.load %arg1[%c0_1] : memref<4xf32, #tpu.memory_space<smem>>
    %c1 = arith.constant 1 : index
    %2 = memref.load %arg1[%c1] : memref<4xf32, #tpu.memory_space<smem>>
    %c2 = arith.constant 2 : index
    %3 = memref.load %arg1[%c2] : memref<4xf32, #tpu.memory_space<smem>>
    %c3 = arith.constant 3 : index
    %4 = memref.load %arg1[%c3] : memref<4xf32, #tpu.memory_space<smem>>
    %5 = vector.broadcast %1 : f32 to vector<8x2xf32>
    %6 = arith.mulf %5, %0 : vector<8x2xf32>
    %7 = vector.broadcast %2 : f32 to vector<8x2xf32>
    %8 = arith.addf %6, %7 : vector<8x2xf32>
    %cst = arith.constant dense<0xFF800000> : vector<2xf32>
    %9 = vector.multi_reduction <maximumf>, %0, %cst [0] : vector<8x2xf32> to vector<2xf32>
    %10 = vector.shape_cast %9 : vector<2xf32> to vector<1x2xf32>
    %cst_2 = arith.constant dense<0x7F800000> : vector<2xf32>
    %11 = vector.multi_reduction <minimumf>, %0, %cst_2 [0] : vector<8x2xf32> to vector<2xf32>
    %12 = vector.shape_cast %11 : vector<2xf32> to vector<1x2xf32>
    %cst_3 = arith.constant 0.000000e+00 : f32
    %13 = vector.broadcast %cst_3 : f32 to vector<8x2xf32>
    %14 = arith.cmpf oge, %8, %13 : vector<8x2xf32>
    %15 = vector.broadcast %10 : vector<1x2xf32> to vector<8x2xf32>
    %16 = arith.mulf %8, %15 : vector<8x2xf32>
    %17 = vector.broadcast %12 : vector<1x2xf32> to vector<8x2xf32>
    %18 = arith.mulf %8, %17 : vector<8x2xf32>
    %19 = arith.select %14, %16, %18 : vector<8x2xi1>, vector<8x2xf32>
    %cst_4 = arith.constant 0.000000e+00 : f32
    %20 = vector.broadcast %cst_4 : f32 to vector<8x2xf32>
    %cst_5 = arith.constant 0.000000e+00 : f32
    %21 = vector.broadcast %cst_5 : f32 to vector<8x2xf32>
    %22 = vector.shape_cast %0 : vector<8x2xf32> to vector<8x1x2xf32>
    %23 = vector.shape_cast %8 : vector<8x2xf32> to vector<1x8x2xf32>
    %24 = vector.broadcast %22 : vector<8x1x2xf32> to vector<8x8x2xf32>
    %25 = vector.broadcast %23 : vector<1x8x2xf32> to vector<8x8x2xf32>
    %26 = arith.mulf %24, %25 : vector<8x8x2xf32>
    %27 = vector.shape_cast %19 : vector<8x2xf32> to vector<1x8x2xf32>
    %28 = vector.broadcast %27 : vector<1x8x2xf32> to vector<8x8x2xf32>
    %29 = arith.subf %26, %28 : vector<8x8x2xf32>
    %30 = math.exp %29 : vector<8x8x2xf32>
    %cst_6 = arith.constant dense<0.000000e+00> : vector<8x2xf32>
    %31 = vector.multi_reduction <add>, %30, %cst_6 [0] : vector<8x8x2xf32> to vector<8x2xf32>
    %32 = arith.addf %21, %31 : vector<8x2xf32>
    %33 = vector.shape_cast %0 : vector<8x2xf32> to vector<8x1x2xf32>
    %34 = vector.broadcast %33 : vector<8x1x2xf32> to vector<8x8x2xf32>
    %35 = arith.mulf %30, %34 : vector<8x8x2xf32>
    %cst_7 = arith.constant dense<0.000000e+00> : vector<8x2xf32>
    %36 = vector.multi_reduction <add>, %35, %cst_7 [0] : vector<8x8x2xf32> to vector<8x2xf32>
    %37 = arith.addf %20, %36 : vector<8x2xf32>
    %38 = vector.broadcast %3 : f32 to vector<8x2xf32>
    %39 = arith.mulf %38, %37 : vector<8x2xf32>
    %40 = tpu.reciprocal %32 {approx = true} : vector<8x2xf32> -> vector<8x2xf32>
    %41 = arith.mulf %39, %40 : vector<8x2xf32>
    %42 = vector.broadcast %4 : f32 to vector<8x2xf32>
    %43 = arith.addf %41, %42 : vector<8x2xf32>
    %c0_8 = arith.constant 0 : index
    %c0_9 = arith.constant 0 : index
    %44 = vector.load %arg3[%c0_8, %c0_9] : memref<8x2xf32, #tpu.memory_space<vmem>>, vector<8x2xf32>
    tpu.vector_store %arg3[%c0_8, %c0_9], %43 {strides = array<i32>} : memref<8x2xf32, #tpu.memory_space<vmem>>, vector<8x2xf32>,
    return
  }
  func.func @transform_0(%arg0: i32) -> i32 {
    %c0_i32 = arith.constant 0 : i32
    %c0_i32_0 = arith.constant 0 : i32
    return %c0_i32 : i32
  }
  func.func @transform_1(%arg0: i32) -> (i32, i32) {
    %c0_i32 = arith.constant 0 : i32
    %c0_i32_0 = arith.constant 0 : i32
    return %c0_i32, %arg0 : i32, i32
  }
  func.func @transform_2(%arg0: i32) -> (i32, i32) {
    %c0_i32 = arith.constant 0 : i32
    %c0_i32_0 = arith.constant 0 : i32
    return %c0_i32, %arg0 : i32, i32
  }
}

</mosaic_0001>

<bundles_post_ra>
// kernel: tpu_custom_call.1
= control target key start
LH: loop header
LB: loop body
LE: loop exit
PB: predicated region body
PF: predicated region fallthrough
CT: control target
= control target key end

     0   :  { %7 = vsyncpa [#allocation3], 0  ;;  %s196_s12 = smov [#allocation2]   ;;  %s261_s0 = inlined_call_operand.vmem [shape: f32[4], index: 0, kind: input, shape index: {}]   ;;  %s262_s1 = inlined_call_operand.vmem [shape: f32[8,2], index: 1, kind: input, shape index: {}]   ;;  %s263_s2 = inlined_call_operand.vmem [shape: f32[8,2], index: 2, kind: output, shape index: {}]  }
   0x1   :  { %s13_s11 = sshll.u32 %s261_s0, 4  ;;  %s14_s11 = int_to_ptr.vmem [resolvable:$true] %s13_s11 }
   0x2   :  { %16 = dma.vmem_to_smem %s14_s11, 16, %s196_s12, [#allocation3]  }
   0x3   :  { %194 = dma.done.wait [#allocation3], 16  }
   0x4   :  { %195 = vsyncadd [#allocation3], 4294967280 }
   0x5   :  { %23 = sfence }
   0x6   :  { %v218_v0 = vld [vmem:[%s262_s1] sm:$0xff]  ;;  %s25_s15 = sld [smem:[#allocation2]]  ;;  %vm33_vm0 = vcmask 15360  }
   0x7   :  { %s160_s16 = sld [smem:[#allocation2 + $0x1]]  ;;  %v34_v1 = vsel %vm33_vm0, %v218_v0, -inf  ;;  %v41_v2 = vsel %vm33_vm0, %v218_v0, inf  ;;  %v53_v7 = vrot.slane %v218_v0, 1  ;;  %v54_v8 = vrot.slane %v218_v0, 2 }
   0x8   :  { %v35_v3 = vrot.slane %v34_v1, 4  ;;  %v42_v4 = vrot.slane %v41_v2, 4  ;;  %v55_v9 = vrot.slane %v218_v0, 3  ;;  %v56_v10 = vrot.slane %v218_v0, 4  ;;  %s161_s0 = sld [smem:[#allocation2 + $0x2]] }
   0x9   :  { %v57_v14 = vrot.slane %v218_v0, 5  ;;  %v58_v17 = vrot.slane %v218_v0, 6  ;;  %v59_v20 = vrot.slane %v218_v0, 7  ;;  %v60_v21 = vperm.slane %v218_v0, 0  ;;  %s162_s1 = sld [smem:[#allocation2 + $0x3]] }
   0xa   :  { %v36_v5 = vmax.f32 %v34_v1, %v35_v3  ;;  %v43_v6 = vmin.f32 %v41_v2, %v42_v4  ;;  %v61_v23 = vperm.slane %v53_v7, 0  ;;  %v62_v24 = vperm.slane %v54_v8, 0 }
   0xb   :  { %v63_v25 = vperm.slane %v55_v9, 0  ;;  %v64_v28 = vperm.slane %v56_v10, 0  ;;  %v65_v29 = vperm.slane %v57_v14, 0  ;;  %v233_v30 = vperm.slane %v58_v17, 0 }
   0xc   :  { %v29_v11 = vstv %s25_s15  ;;  %v37_v12 = vrot.slane %v36_v5, 2  ;;  %v44_v13 = vrot.slane %v43_v6, 2  ;;  %v235_v33 = vperm.slane %v59_v20, 0 }
   0xd   :  { %v30_v15 = vmul.f32 %v29_v11, %v218_v0  ;;  %v31_v16 = vstv %s160_s16 }
   0xe   :  { %v38_v18 = vmax.f32 %v36_v5, %v37_v12  ;;  %v45_v19 = vmin.f32 %v43_v6, %v44_v13 }
   0xf   :  { %v32_v22 = vadd.f32 %v31_v16, %v30_v15 }
  0x10   :  { %v39_v26 = vrot.slane %v38_v18, 1  ;;  %v46_v27 = vrot.slane %v45_v19, 1 }
  0x11   :  { %vm48_vm1 = vcmp.ge.f32.partialorder %v32_v22, 0.0  ;;  %v76_v34 = vmul.f32 %v60_v21, %v32_v22  ;;  %v77_v35 = vmul.f32 %v61_v23, %v32_v22  ;;  %v78_v36 = vmul.f32 %v62_v24, %v32_v22 }
  0x12   :  { %v40_v31 = vmax.f32 %v38_v18, %v39_v26  ;;  %v47_v32 = vmin.f32 %v45_v19, %v46_v27  ;;  %v79_v37 = vmul.f32 %v63_v25, %v32_v22  ;;  %v80_v40 = vmul.f32 %v64_v28, %v32_v22 }
  0x13   :  { %v81_v41 = vmul.f32 %v65_v29, %v32_v22  ;;  %v82_v43 = vmul.f32 %v233_v30, %v32_v22  ;;  %v83_v44 = vmul.f32 %v235_v33, %v32_v22 }
  0x14   :  { %v49_v38 = vmul.f32 %v40_v31, %v32_v22  ;;  %v50_v39 = vmul.f32 %v47_v32, %v32_v22 }
  0x16   :  { %v51_v42 = vsel %vm48_vm1, %v49_v38, %v50_v39 }
  0x17   :  { %v84_v45 = vsub.f32 %v76_v34, %v51_v42  ;;  %v85_v46 = vsub.f32 %v77_v35, %v51_v42  ;;  %v86_v47 = vsub.f32 %v78_v36, %v51_v42  ;;  %v87_v48 = vsub.f32 %v79_v37, %v51_v42 }
  0x18   :  { %v88_v49 = vsub.f32 %v80_v40, %v51_v42  ;;  %v89_v50 = vsub.f32 %v81_v41, %v51_v42  ;;  %v90_v54 = vsub.f32 %v82_v43, %v51_v42  ;;  %v91_v56 = vsub.f32 %v83_v44, %v51_v42 }
  0x19   :  { %v92_v51 = vmul.f32 1.442695, %v84_v45  ;;  %v94_v52 = vmul.f32 1.442695, %v85_v46  ;;  %v96_v53 = vmul.f32 1.442695, %v86_v47  ;;  %v148_v44 = vstv %s161_s0 }
  0x1a   :  { %v98_v55 = vmul.f32 1.442695, %v87_v48  ;;  %v100_v57 = vmul.f32 1.442695, %v88_v49  ;;  %v102_v58 = vmul.f32 1.442695, %v89_v50  ;;  %v152_v46 = vstv %s162_s1 }
  0x1b   :  { %164 = vpow2.f32 %v92_v51  ;;  %v104_v59 = vmul.f32 1.442695, %v90_v54  ;;  %v106_v60 = vmul.f32 1.442695, %v91_v56 }
  0x1c   :  { %166 = vpow2.f32 %v94_v52 }
  0x1d   :  { %168 = vpow2.f32 %v96_v53 }
  0x1e   :  { %170 = vpow2.f32 %v98_v55 }
  0x1f   :  { %172 = vpow2.f32 %v100_v57 }
  0x20   :  { %174 = vpow2.f32 %v102_v58 }
  0x21   :  { %v165_v61 = vpop.eup %164  ;;  %176 = vpow2.f32 %v104_v59 }
  0x22   :  { %v167_v62 = vpop.eup %166  ;;  %v108_v63 = vsel %vm33_vm0, %v165_v61, 0.0  ;;  %v124_v0 = vmul.f32 %v165_v61, %v60_v21  ;;  %178 = vpow2.f32 %v106_v60 }
  0x23   :  { %v169_v1 = vpop.eup %168  ;;  %v109_v2 = vsel %vm33_vm0, %v167_v62, 0.0  ;;  %v125_v3 = vmul.f32 %v167_v62, %v61_v23 }
  0x24   :  { %v171_v4 = vpop.eup %170  ;;  %v110_v5 = vadd.f32 %v109_v2, %v108_v63  ;;  %v111_v6 = vsel %vm33_vm0, %v169_v1, 0.0  ;;  %v126_v7 = vmul.f32 %v169_v1, %v62_v24  ;;  %v132_v8 = vsel %vm33_vm0, %v124_v0, 0.0 }
  0x25   :  { %v173_v9 = vpop.eup %172  ;;  %v113_v10 = vsel %vm33_vm0, %v171_v4, 0.0  ;;  %v127_v11 = vmul.f32 %v171_v4, %v63_v25  ;;  %v133_v12 = vsel %vm33_vm0, %v125_v3, 0.0 }
  0x26   :  { %v175_v13 = vpop.eup %174  ;;  %v112_v14 = vadd.f32 %v111_v6, %v110_v5  ;;  %v128_v15 = vmul.f32 %v173_v9, %v64_v28  ;;  %v134_v16 = vadd.f32 %v133_v12, %v132_v8  ;;  %v115_v17 = vsel %vm33_vm0, %v173_v9, 0.0 }
  0x27   :  { %v129_v18 = vmul.f32 %v175_v13, %v65_v29  ;;  %v135_v19 = vsel %vm33_vm0, %v126_v7, 0.0  ;;  %v137_v20 = vsel %vm33_vm0, %v127_v11, 0.0  ;;  %v177_v21 = vpop.eup %176  ;;  %v117_v26 = vsel %vm33_vm0, %v175_v13, 0.0 }
  0x28   :  { %v114_v22 = vadd.f32 %v113_v10, %v112_v14  ;;  %v136_v23 = vadd.f32 %v135_v19, %v134_v16  ;;  %v179_v24 = vpop.eup %178  ;;  %v130_v25 = vmul.f32 %v177_v21, %v233_v30  ;;  %v139_v27 = vsel %vm33_vm0, %v128_v15, 0.0 }
  0x29   :  { %v119_v32 = vsel %vm33_vm0, %v177_v21, 0.0  ;;  %v131_v29 = vmul.f32 %v179_v24, %v235_v33  ;;  %v141_v34 = vsel %vm33_vm0, %v129_v18, 0.0  ;;  %v121_v37 = vsel %vm33_vm0, %v179_v24, 0.0 }
  0x2a   :  { %v116_v28 = vadd.f32 %v115_v17, %v114_v22  ;;  %v138_v31 = vadd.f32 %v137_v20, %v136_v23  ;;  %v143_v38 = vsel %vm33_vm0, %v130_v25, 0.0 }
  0x2b   :  { %v145_v30 = vsel %vm33_vm0, %v131_v29, 0.0 }
  0x2c   :  { %v118_v35 = vadd.f32 %v117_v26, %v116_v28  ;;  %v140_v36 = vadd.f32 %v139_v27, %v138_v31 }
  0x2e   :  { %v120_v39 = vadd.f32 %v119_v32, %v118_v35  ;;  %v142_v40 = vadd.f32 %v141_v34, %v140_v36 }
  0x30   :  { %v122_v41 = vadd.f32 %v121_v37, %v120_v39  ;;  %v144_v42 = vadd.f32 %v143_v38, %v142_v40 }
  0x32   :  { %v146_v43 = vadd.f32 %v145_v30, %v144_v42  ;;  %180 = vrcp.f32 %v122_v41 }
  0x34   :  { %v149_v45 = vmul.f32 %v148_v44, %v146_v43 }
  0x38   :  { %v181_v33 = vpop.eup %180 }
  0x39   :  { %v151_v47 = vmul.f32 %v181_v33, %v149_v45 }
  0x3b   :  { %v153_v48 = vadd.f32 %v152_v46, %v151_v47 }
  0x3d   :  { %154 = vst.msk [vmem:[%s263_s2] sm:$0xff] %vm33_vm0, %v153_v48 }
  0x3e   :  { %159 = vsyncpa [#allocation3], 1 }

</bundles_post_ra>
